<compile_context>
chip_gen: v7x
topology: tpu7x:2x2x1
jax: 0.10.0
libtpu: 0.0.40
codegen_flags: <defaults>
</compile_context>

<pallas_src>
import jax
import jax.numpy as jnp
from jax.experimental import pallas as pl
from jax.experimental.pallas import tpu as pltpu


def evaluator_kernel(x_ref, w1t_ref, b1t_ref, w2t_ref, b2t_ref, ot_ref):
    # x_ref:   (TM, D)  natural batch-major X tile (no wrapper transpose/pad)
    # w1t_ref: (H, D), b1t_ref: (H, 1)
    # w2t_ref: (O, H), b2t_ref: (O, 1)
    # ot_ref:  (O, TM)  lane-dense, feature-major output tile
    x = x_ref[...]
    # h = W1^T @ X^T -> (H, TM); the in-kernel transpose of the X tile goes to
    # the XLU (idle in this kernel) and overlaps with the MXU.
    h = jnp.tanh(
        jnp.dot(w1t_ref[...], x.T, preferred_element_type=jnp.float32)
        + b1t_ref[...]
    )
    y = jnp.dot(w2t_ref[...], h, preferred_element_type=jnp.float32) + b2t_ref[...]
    ot_ref[...] = y.astype(ot_ref.dtype)


def evaluator_forward(X, x_mean, x_scale, W1, b1, W2, b2, y_mean, y_scale,
                      tm=2048):
    """Equivalent of Evaluator.forward: yscaler^-1( model( xscaler(X) ) )."""
    X = jnp.asarray(X, jnp.float32)
    N, D = X.shape
    H = W1.shape[1]
    O = W2.shape[1]

    # ---- one-time constant fold of both scalers into the MLP parameters ----
    # NOTE: with x_scale values near zero the 1/x_scale amplification could
    # change rounding vs. the reference; fine for typical scaler stats.
    inv_xs = 1.0 / x_scale                                # (1, D)
    W1f = W1 * inv_xs.reshape(D, 1)                       # (D, H) row-scaled
    b1f = b1 - (x_mean * inv_xs) @ W1                     # (1, H)
    W2f = W2 * y_scale                                    # (H, O) col-scaled
    b2f = b2 * y_scale + y_mean                           # (1, O)

    # Feature-major weights/biases (tiny; DMA'd once, stay VMEM-resident).
    w1t = jnp.asarray(W1f.T, jnp.float32)                 # (H, D)
    b1t = jnp.asarray(b1f.T, jnp.float32)                 # (H, 1)
    w2t = jnp.asarray(W2f.T, jnp.float32)                 # (O, H)
    b2t = jnp.asarray(b2f.T, jnp.float32)                 # (O, 1)

    # ---- batch tiling --------------------------------------------------
    # TM is a multiple of 128 (it is the lane axis of the output tile).
    # Cap it so the 1-D parallel grid keeps at least 2 steps when N allows it
    # (v7x megacore), and never exceed a single padded block for tiny N.
    tm = max(128, min(tm, 128 * pl.cdiv(pl.cdiv(N, 2), 128)))
    tm = min(tm, 128 * pl.cdiv(N, 128))
    grid = (pl.cdiv(N, tm),)

    cost = pl.CostEstimate(
        flops=2 * N * (D * H + H * O),
        transcendentals=N * H,
        bytes_accessed=(N * (D + O) + D * H + H + H * O + O) * 4,
    )

    out_t = pl.pallas_call(
        evaluator_kernel,
        out_shape=jax.ShapeDtypeStruct((O, N), jnp.float32),
        grid=grid,
        in_specs=[
            pl.BlockSpec((tm, D), lambda i: (i, 0)),      # X tile (pipelined)
            pl.BlockSpec((H, D), lambda i: (0, 0)),       # W1^T  (resident)
            pl.BlockSpec((H, 1), lambda i: (0, 0)),       # b1^T  (resident)
            pl.BlockSpec((O, H), lambda i: (0, 0)),       # W2^T  (resident)
            pl.BlockSpec((O, 1), lambda i: (0, 0)),       # b2^T  (resident)
        ],
        out_specs=pl.BlockSpec((O, tm), lambda i: (0, i)),
        compiler_params=pltpu.CompilerParams(
            dimension_semantics=("parallel",)),
        cost_estimate=cost,
    )(X, w1t, b1t, w2t, b2t)

    # Return in the module's (N, O) layout.  (O is tiny, so this final
    # transpose is ~32 B/sample; callers that accept (O, N) can drop it.)
    return out_t.T


def reference_forward(X, x_mean, x_scale, W1, b1, W2, b2, y_mean, y_scale):
    x_tr = (X - x_mean) / x_scale
    h = jnp.tanh(x_tr @ W1 + b1)
    y_tr = h @ W2 + b2
    return y_tr * y_scale + y_mean


if __name__ == "__main__":
    # Small shapes consistent with the Evaluator's forward:
    # batch=8 samples, 32 input features, 64 hidden units, 8 outputs.
    N, D, H, O = 8, 32, 64, 8

    key = jax.random.PRNGKey(0)
    keys = jax.random.split(key, 9)

    X = jax.random.normal(keys[0], (N, D), dtype=jnp.float32)

    # Deterministic synthetic parameters (scaler stats + MLP weights).
    x_mean = jax.random.normal(keys[1], (1, D), dtype=jnp.float32) * 0.5
    x_scale = jax.random.uniform(keys[2], (1, D), dtype=jnp.float32,
                                 minval=0.5, maxval=1.5)
    W1 = jax.random.normal(keys[3], (D, H), dtype=jnp.float32) * (1.0 / jnp.sqrt(D))
    b1 = jax.random.normal(keys[4], (1, H), dtype=jnp.float32) * 0.1
    W2 = jax.random.normal(keys[5], (H, O), dtype=jnp.float32) * (1.0 / jnp.sqrt(H))
    b2 = jax.random.normal(keys[6], (1, O), dtype=jnp.float32) * 0.1
    y_mean = jax.random.normal(keys[7], (1, O), dtype=jnp.float32)
    y_scale = jax.random.uniform(keys[8], (1, O), dtype=jnp.float32,
                                 minval=0.5, maxval=2.0)

    out = evaluator_forward(X, x_mean, x_scale, W1, b1, W2, b2, y_mean, y_scale)
    out = jax.block_until_ready(out)

    ref = reference_forward(X, x_mean, x_scale, W1, b1, W2, b2, y_mean, y_scale)
    assert out.shape == (N, O)
    assert jnp.allclose(out, ref, atol=1e-4, rtol=1e-4), "mismatch vs reference"

    print("KERNEL_OK")
</pallas_src>

<mosaic_0001>
module attributes {stable_mosaic.version = 11 : i64} {
  func.func @evaluator_kernel(%arg0: i32, %arg1: memref<128x32xf32, #tpu.memory_space<vmem>>, %arg2: memref<64x32xf32, #tpu.memory_space<vmem>>, %arg3: memref<64x1xf32, #tpu.memory_space<vmem>>, %arg4: memref<8x64xf32, #tpu.memory_space<vmem>>, %arg5: memref<8x1xf32, #tpu.memory_space<vmem>>, %arg6: memref<8x128xf32, #tpu.memory_space<vmem>>) attributes {dimension_semantics = [#tpu.dimension_semantics<parallel>], iteration_bounds = array<i64: 1>, scalar_prefetch = 0 : i64, scratch_operands = 0 : i64, tpu.core_type = #tpu.core_type<tc>, window_params = [{transform_indices = @transform_0, window_bounds = array<i64: 128, 32>}, {pipeline_mode = #tpu.pipeline_mode<synchronous>, transform_indices = @transform_1, window_bounds = array<i64: 64, 32>}, {pipeline_mode = #tpu.pipeline_mode<synchronous>, transform_indices = @transform_2, window_bounds = array<i64: 64, 1>}, {pipeline_mode = #tpu.pipeline_mode<synchronous>, transform_indices = @transform_3, window_bounds = array<i64: 8, 64>}, {pipeline_mode = #tpu.pipeline_mode<synchronous>, transform_indices = @transform_4, window_bounds = array<i64: 8, 1>}, {transform_indices = @transform_5, window_bounds = array<i64: 8, 128>}]} {
    %c0 = arith.constant 0 : index
    %c0_0 = arith.constant 0 : index
    %0 = vector.load %arg1[%c0, %c0_0] : memref<128x32xf32, #tpu.memory_space<vmem>>, vector<128x32xf32>
    %c0_1 = arith.constant 0 : index
    %c0_2 = arith.constant 0 : index
    %1 = vector.load %arg2[%c0_1, %c0_2] : memref<64x32xf32, #tpu.memory_space<vmem>>, vector<64x32xf32>
    %2 = tpu.transpose %0, [1, 0] : vector<128x32xf32> -> vector<32x128xf32>
    %cst = arith.constant dense<0.000000e+00> : vector<64x128xf32>
    %3 = tpu.matmul %1, %2, %cst {dimension_numbers = #tpu.dot_dimension_numbers<[1], [0], [0], [1], [0, 0, 1, 1], [], []>} : vector<64x32xf32>, vector<32x128xf32>, vector<64x128xf32> -> vector<64x128xf32>
    %c0_3 = arith.constant 0 : index
    %c0_4 = arith.constant 0 : index
    %4 = vector.load %arg3[%c0_3, %c0_4] : memref<64x1xf32, #tpu.memory_space<vmem>>, vector<64x1xf32>
    %5 = vector.broadcast %4 : vector<64x1xf32> to vector<64x128xf32>
    %6 = arith.addf %3, %5 : vector<64x128xf32>
    %7 = math.tanh %6 : vector<64x128xf32>
    %c0_5 = arith.constant 0 : index
    %c0_6 = arith.constant 0 : index
    %8 = vector.load %arg4[%c0_5, %c0_6] : memref<8x64xf32, #tpu.memory_space<vmem>>, vector<8x64xf32>
    %cst_7 = arith.constant dense<0.000000e+00> : vector<8x128xf32>
    %9 = tpu.matmul %8, %7, %cst_7 {dimension_numbers = #tpu.dot_dimension_numbers<[1], [0], [0], [1], [0, 0, 1, 1], [], []>} : vector<8x64xf32>, vector<64x128xf32>, vector<8x128xf32> -> vector<8x128xf32>
    %c0_8 = arith.constant 0 : index
    %c0_9 = arith.constant 0 : index
    %10 = vector.load %arg5[%c0_8, %c0_9] : memref<8x1xf32, #tpu.memory_space<vmem>>, vector<8x1xf32>
    %11 = vector.broadcast %10 : vector<8x1xf32> to vector<8x128xf32>
    %12 = arith.addf %9, %11 : vector<8x128xf32>
    %c0_10 = arith.constant 0 : index
    %c0_11 = arith.constant 0 : index
    %13 = vector.load %arg6[%c0_10, %c0_11] : memref<8x128xf32, #tpu.memory_space<vmem>>, vector<8x128xf32>
    tpu.vector_store %arg6[%c0_10, %c0_11], %12 {strides = array<i32>} : memref<8x128xf32, #tpu.memory_space<vmem>>, vector<8x128xf32>,
    return
  }
  func.func @transform_0(%arg0: i32) -> (i32, i32) {
    %c0_i32 = arith.constant 0 : i32
    %c0_i32_0 = arith.constant 0 : i32
    return %arg0, %c0_i32 : i32, i32
  }
  func.func @transform_1(%arg0: i32) -> (i32, i32) {
    %c0_i32 = arith.constant 0 : i32
    %c0_i32_0 = arith.constant 0 : i32
    %c0_i32_1 = arith.constant 0 : i32
    return %c0_i32, %c0_i32_0 : i32, i32
  }
  func.func @transform_2(%arg0: i32) -> (i32, i32) {
    %c0_i32 = arith.constant 0 : i32
    %c0_i32_0 = arith.constant 0 : i32
    %c0_i32_1 = arith.constant 0 : i32
    return %c0_i32, %c0_i32_0 : i32, i32
  }
  func.func @transform_3(%arg0: i32) -> (i32, i32) {
    %c0_i32 = arith.constant 0 : i32
    %c0_i32_0 = arith.constant 0 : i32
    %c0_i32_1 = arith.constant 0 : i32
    return %c0_i32, %c0_i32_0 : i32, i32
  }
  func.func @transform_4(%arg0: i32) -> (i32, i32) {
    %c0_i32 = arith.constant 0 : i32
    %c0_i32_0 = arith.constant 0 : i32
    %c0_i32_1 = arith.constant 0 : i32
    return %c0_i32, %c0_i32_0 : i32, i32
  }
  func.func @transform_5(%arg0: i32) -> (i32, i32) {
    %c0_i32 = arith.constant 0 : i32
    %c0_i32_0 = arith.constant 0 : i32
    return %c0_i32, %arg0 : i32, i32
  }
}

</mosaic_0001>

<bundles_post_ra>
// kernel: tpu_custom_call.1
= control target key start
LH: loop header
LB: loop body
LE: loop exit
PB: predicated region body
PF: predicated region fallthrough
CT: control target
= control target key end

     0   :  { %vm93_vm0 = vcmask 261120   ;;  %v603_v6 = vmov 0   ;;  %s798_s0 = inlined_call_operand.vmem [shape: f32[8,32], index: 0, kind: input, shape index: {}]   ;;  %s799_s1 = inlined_call_operand.vmem [shape: f32[64,32], index: 1, kind: input, shape index: {}]   ;;  %s800_s2 = inlined_call_operand.vmem [shape: f32[64,1], index: 2, kind: input, shape index: {}]   ;;  %s801_s3 = inlined_call_operand.vmem [shape: f32[8,64], index: 3, kind: input, shape index: {}]   ;;  %s802_s4 = inlined_call_operand.vmem [shape: f32[8,1], index: 4, kind: input, shape index: {}]   ;;  %s803_s5 = inlined_call_operand.hbm [shape: f32[8,8], index: 5, kind: output, shape index: {}]  }
   0x1   :  { %v21_v0 = vld [vmem:[%s798_s0] sm:$0xff]  ;;  %v22_v1 = vld [vmem:[%s798_s0 + $0x8] sm:$0xff]  ;;  %v23_v2 = vld [vmem:[%s798_s0 + $0x10] sm:$0xff]  ;;  %561 = vset.pattern.permute.xlu0 %v603_v6  ;;  %562 = vset.pattern.permute.xlu1 %v603_v6 }
   0x2   :  { %v496_v3 = vpack.c.bf16 %v22_v1, %v21_v0  ;;  %vm649_vm1 = vmpackc.low %vm93_vm0, %vm93_vm0  ;;  %v24_v5 = vld [vmem:[%s798_s0 + $0x18] sm:$0xff]  ;;  %v37_v8 = vld [vmem:[%s799_s1] sm:$0xff] }
   0x3   :  { %v502_v7 = vpack.c.bf16 %v24_v5, %v23_v2  ;;  %v25_v9 = vld [vmem:[%s798_s0 + $0x20] sm:$0xff]  ;;  %v26_v10 = vld [vmem:[%s798_s0 + $0x28] sm:$0xff]  ;;  %465 = vmatprep.mubr.msk.f32.mxu0 %vm93_vm0, %v37_v8  ;;  %v47_v13 = vld [vmem:[%s800_s2 + $0x10] sm:$0xff] }
   0x4   :  { %498 = vmatprep.subr.msk.bf16.mxu0 %vm649_vm1, %v496_v3  ;;  %v45_v11 = vld [vmem:[%s800_s2] sm:$0xff]  ;;  %v508_v12 = vpack.c.bf16 %v26_v10, %v25_v9  ;;  %v46_v14 = vld [vmem:[%s800_s2 + $0x8] sm:$0xff]  ;;  %65 = vperm.xlu1 %562, %v47_v13   ;;  %v48_v15 = vld [vmem:[%s800_s2 + $0x18] sm:$0xff] }
   0x5   :  { %501 = vmatpush3.bf16.xpose.msk.msra.mxu0 %vm649_vm1, %v496_v3  ;;  %55 = vperm.xlu0 %561, %v45_v11  }
   0x6   :  { %504 = vmatprep.subr.msk.bf16.mxu0 %vm649_vm1, %v502_v7 }
   0x7   :  { %10 = vsyncpa [#allocation3], 0  ;;  %v27_v16 = vld [vmem:[%s798_s0 + $0x30] sm:$0xff]  ;;  %v28_v17 = vld [vmem:[%s798_s0 + $0x38] sm:$0xff]  ;;  %v604_v43 = vmov 0.0|0.0   ;;  %vm605_vm2 = vmmov 0  }
   0x8   :  { %v49_v18 = vld [vmem:[%s800_s2 + $0x20] sm:$0xff]  ;;  %70 = vperm.xlu1 %562, %v48_v15   ;;  %v50_v19 = vld [vmem:[%s800_s2 + $0x28] sm:$0xff]  ;;  %v514_v20 = vpack.c.bf16 %v28_v17, %v27_v16  ;;  %v51_v21 = vld [vmem:[%s800_s2 + $0x30] sm:$0xff]  ;;  %544 = vmatprep.subr.bf16.mxu1 %v604_v43  ;;  %v606_v44 = vmov 0.0   ;;  %vm286_vm3 = vcmask 523264   ;;  %s607_s7 = smov [#allocation2]  }
   0x9   :  { %60 = vperm.xlu0 %561, %v46_v14   ;;  %v52_v22 = vld [vmem:[%s800_s2 + $0x38] sm:$0xff]  ;;  %v29_v23 = vld [vmem:[%s798_s0 + $0x40] sm:$0xff]  ;;  %v30_v24 = vld [vmem:[%s798_s0 + $0x48] sm:$0xff]  ;;  %493 = vmatprep.mubr.msk.f32.mxu1 %vm605_vm2, %v606_v44  ;;  %s367_s2 = sshll.u32 %s607_s7, 4  ;;  %s368_s2 = int_to_ptr.vmem [resolvable:$true] %s367_s2 }
   0xa   :  { %v280_v25 = vld [vmem:[%s802_s4] sm:$0xff]  ;;  %v520_v26 = vpack.c.bf16 %v30_v24, %v29_v23  ;;  %v31_v27 = vld [vmem:[%s798_s0 + $0x50] sm:$0xff]  ;;  %v32_v28 = vld [vmem:[%s798_s0 + $0x58] sm:$0xff]  ;;  %s579_s8 = scalar_lea.vmem %s368_s2, 128  ;;  %p584_p1 = scmp.lt.s32.totalorder %s368_s2, %s368_s2 }
   0xb   :  { %v526_v29 = vpack.c.bf16 %v32_v28, %v31_v27  ;;  %v33_v30 = vld [vmem:[%s798_s0 + $0x60] sm:$0xff]  ;;  %v34_v31 = vld [vmem:[%s798_s0 + $0x68] sm:$0xff]  ;;  %v35_v33 = vld [vmem:[%s798_s0 + $0x70] sm:$0xff]  ;;  %p580_p0 = scmp.ne.s32.totalorder %s368_s2, %s579_s8  ;;  %p585_p2 = scmp.lt.s32.totalorder %s579_s8, %s579_s8 }
   0xc   :  { %80 = vperm.xlu1 %562, %v50_v19   ;;  %v532_v32 = vpack.c.bf16 %v34_v31, %v33_v30  ;;  %v36_v34 = vld [vmem:[%s798_s0 + $0x78] sm:$0xff]  ;;  %v38_v36 = vld [vmem:[%s799_s1 + $0x8] sm:$0xff]  ;;  %v39_v37 = vld [vmem:[%s799_s1 + $0x10] sm:$0xff] }
   0xd   :  { %507 = vmatpush3.bf16.xpose.msk.msra.mxu0 %vm649_vm1, %v502_v7  ;;  %75 = vperm.xlu0 %561, %v49_v18   ;;  %v538_v35 = vpack.c.bf16 %v36_v34, %v35_v33  ;;  %v40_v38 = vld [vmem:[%s799_s1 + $0x18] sm:$0xff]  ;;  %v41_v39 = vld [vmem:[%s799_s1 + $0x20] sm:$0xff]  ;;  %v42_v40 = vld [vmem:[%s799_s1 + $0x28] sm:$0xff]  ;;  %p586_p3 = por %p585_p2, %p584_p1 }
   0xe   :  { %510 = vmatprep.subr.msk.bf16.mxu0 %vm649_vm1, %v508_v12  ;;  %v43_v41 = vld [vmem:[%s799_s1 + $0x30] sm:$0xff]  ;;  %v44_v42 = vld [vmem:[%s799_s1 + $0x38] sm:$0xff]  ;;  %v279_v17 = vld [vmem:[%s801_s3] sm:$0xff] }
   0xf   :  { %p587_p4 = pnand %p586_p3, %p580_p0 }
  0x10   :  { %90 = vperm.xlu1 %562, %v52_v22  }
  0x11   :  { %85 = vperm.xlu0 %561, %v51_v21  }
  0x15   :  { %513 = vmatpush3.bf16.xpose.msk.msra.mxu0 %vm649_vm1, %v508_v12  ;;  %283 = vperm.xlu0 %561, %v280_v25  }
  0x16   :  { %516 = vmatprep.subr.msk.bf16.mxu0 %vm649_vm1, %v514_v20 }
  0x1d   :  { %519 = vmatpush3.bf16.xpose.msk.msra.mxu0 %vm649_vm1, %v514_v20 }
  0x1e   :  { %522 = vmatprep.subr.msk.bf16.mxu0 %vm649_vm1, %v520_v26 }
  0x25   :  { %525 = vmatpush3.bf16.xpose.msk.msra.mxu0 %vm649_vm1, %v520_v26 }
  0x26   :  { %528 = vmatprep.subr.msk.bf16.mxu0 %vm649_vm1, %v526_v29 }
  0x2d   :  { %531 = vmatpush3.bf16.xpose.msk.msra.mxu0 %vm649_vm1, %v526_v29 }
  0x2e   :  { %534 = vmatprep.subr.msk.bf16.mxu0 %vm649_vm1, %v532_v32 }
  0x35   :  { %537 = vmatpush3.bf16.xpose.msk.msra.mxu0 %vm649_vm1, %v532_v32 }
  0x36   :  { %540 = vmatprep.subr.msk.bf16.mxu0 %vm649_vm1, %v538_v35 }
  0x3d   :  { %543 = vmatpush3.bf16.xpose.msk.msra.mxu0 %vm649_vm1, %v538_v35 }
  0x44   :  { %466 = vmatmul.mubr.msk.f32.vlgmr.msra.gmra.mrb[0].mxu0 %vm93_vm0, %v38_v36 }
  0x45   :  { %468 = vmatprep.mubr.msk.f32.mxu0 %vm93_vm0, %v39_v37 }
  0x48   :  { %469 = vmatmul.mubr.msk.f32.gmra.mrb[2].mxu0 %vm93_vm0, %v40_v38 }
  0x49   :  { %471 = vmatprep.mubr.msk.f32.mxu0 %vm93_vm0, %v41_v39 }
  0x4c   :  { %472 = vmatmul.mubr.msk.f32.gmra.mrb[4].mxu0 %vm93_vm0, %v42_v40 }
  0x4d   :  { %474 = vmatprep.mubr.msk.f32.mxu0 %vm93_vm0, %v43_v41 }
  0x50   :  { %475 = vmatmul.mubr.msk.f32.gmra.mrb[6].mxu0 %vm93_vm0, %v44_v42 }
  0x83   :  { %v66_v46 = vpop.permute.xlu1 %65 }
  0x84   :  { %v56_v45 = vpop.permute.xlu0 %55 }
  0x87   :  { %v71_v48 = vpop.permute.xlu1 %70 }
  0x88   :  { %v61_v47 = vpop.permute.xlu0 %60 }
  0x8b   :  { %v81_v56 = vpop.permute.xlu1 %80 }
  0x8c   :  { %v76_v58 = vpop.permute.xlu0 %75 }
  0x8f   :  { %v91_v63 = vpop.permute.xlu1 %90 }
  0x90   :  { %v86_v2 = vpop.permute.xlu0 %85 }
  0x94   :  { %v284_v18 = vpop.permute.xlu0 %283 }
 0x117   :  { %v467_v49 = vpop.f32.mrb[0].mxu0 }
 0x118   :  { %v238_v50 = vadd.f32 %v467_v49, %v61_v47  ;;  %v232_v51 = vpop.f32.mrb[1].mxu0 }
 0x119   :  { %v233_v52 = vadd.f32 %v232_v51, %v56_v45 }
 0x11a   :  { %563 = vtanh.f32 %v238_v50 }
 0x11b   :  { %565 = vtanh.f32 %v233_v52  ;;  %v470_v53 = vpop.f32.mrb[2].mxu0 }
 0x11c   :  { %v248_v54 = vadd.f32 %v470_v53, %v71_v48  ;;  %v242_v55 = vpop.f32.mrb[3].mxu0 }
 0x11d   :  { %v243_v57 = vadd.f32 %v242_v55, %v66_v46 }
 0x11e   :  { %567 = vtanh.f32 %v248_v54 }
 0x11f   :  { %569 = vtanh.f32 %v243_v57  ;;  %v473_v59 = vpop.f32.mrb[4].mxu0 }
 0x120   :  { %v258_v60 = vadd.f32 %v473_v59, %v81_v56  ;;  %v252_v61 = vpop.f32.mrb[5].mxu0 }
 0x121   :  { %v253_v62 = vadd.f32 %v252_v61, %v76_v58 }
 0x122   :  { %571 = vtanh.f32 %v258_v60 }
 0x123   :  { %573 = vtanh.f32 %v253_v62  ;;  %v476_v0 = vpop.f32.mrb[6].mxu0 }
 0x124   :  { %v564_v1 = vpop.eup %563  ;;  %v268_v3 = vadd.f32 %v476_v0, %v91_v63  ;;  %v262_v4 = vpop.f32.mrb[7].mxu0 }
 0x125   :  { %v566_v5 = vpop.eup %565  ;;  %v263_v6 = vadd.f32 %v262_v4, %v86_v2 }
 0x126   :  { %575 = vtanh.f32 %v268_v3  ;;  %v545_v7 = vpack.c.bf16 %v564_v1, %v566_v5 }
 0x127   :  { %577 = vtanh.f32 %v263_v6 }
 0x128   :  { %v568_v8 = vpop.eup %567  ;;  %546 = vmatpush3.bf16.msra.mxu1 %v545_v7 }
 0x129   :  { %v570_v9 = vpop.eup %569  ;;  %547 = vmatprep.subr.bf16.mxu1 %v604_v43 }
 0x12a   :  { %v548_v10 = vpack.c.bf16 %v568_v8, %v570_v9 }
 0x12c   :  { %v572_v11 = vpop.eup %571  ;;  %549 = vmatpush3.bf16.msra.mxu1 %v548_v10 }
 0x12d   :  { %v574_v12 = vpop.eup %573  ;;  %550 = vmatprep.subr.bf16.mxu1 %v604_v43 }
 0x12e   :  { %v551_v13 = vpack.c.bf16 %v572_v11, %v574_v12 }
 0x130   :  { %v576_v14 = vpop.eup %575  ;;  %552 = vmatpush3.bf16.msra.mxu1 %v551_v13 }
 0x131   :  { %v578_v15 = vpop.eup %577  ;;  %553 = vmatprep.subr.bf16.mxu1 %v604_v43 }
 0x132   :  { %v554_v16 = vpack.c.bf16 %v576_v14, %v578_v15 }
 0x134   :  { %555 = vmatpush3.bf16.msra.mxu1 %v554_v16 }
 0x137   :  { %494 = vmatmul.mubr.msk.f32.vlgmr.msra.gmra.mrb[0].mxu1 %vm286_vm3, %v279_v17 }
 0x20a   :  { %v356_v19 = vpop.f32.mrb[0].mxu1 }
 0x20b   :  { %v357_v20 = vadd.f32 %v356_v19, %v284_v18  ;;  %v495_v21 = vpop.f32.mrb[1].mxu1 }
 0x20d   :  { %360 = vst [vmem:[#allocation2] sm:$0xff] %v357_v20 }
 0x20e   :  { %590 = shalt.err (!%p587_p4)
}
 0x20f   :  { %s591_s3 = scalar_lea.hbm %s803_s5, 128 }
 0x210   :  { %p592_p5 = scmp.ne.s32.totalorder %s803_s5, %s591_s3  ;;  %p595_p6 = scmp.lt.u32.totalorder %s591_s3, %s803_s5 }
 0x212   :  { %p597_p7 = pnand %p595_p6, %p592_p5 }
 0x214   :  { %600 = shalt.err (!%p597_p7)
}
 0x215   :  { %370 = dma.vmem_to_hbm [thread:$0]  %s368_s2, 128, %s803_s5, [#allocation3]  }
 0x216   :  { %601 = dma.done.wait [#allocation3], 128  }
 0x217   :  { %602 = vsyncadd [#allocation3], 4294967168 }
 0x218   :  { %374 = vsyncpa [#allocation3], 1 }

</bundles_post_ra>
